<compile_context>
chip_gen: v6e
topology: v6e:2x2x1
jax: 0.10.0
libtpu: 0.0.40
codegen_flags: <defaults>
</compile_context>

<pallas_src>
import functools

import jax
import jax.numpy as jnp
from jax.experimental import pallas as pl
from jax.experimental.pallas import tpu as pltpu


def _ranknet_loss_kernel(o1_ref, o2_ref, t_ref, out_ref, acc_ref, *,
                         B, TB, steps_per_core, needs_mask):
    c = pl.program_id(0)          # row-half (TensorCore) index
    j = pl.program_id(1)          # row-block index within the half

    @pl.when(j == 0)
    def _():
        acc_ref[...] = jnp.zeros_like(acc_ref)

    d = o1_ref[...].astype(jnp.float32) - o2_ref[...].astype(jnp.float32)
    t = t_ref[...].astype(jnp.float32)

    # Clip once to [-100, 100]: in logits form this reproduces PyTorch BCELoss's
    # -100 log clamp.  Then BCE(sigmoid(d), t) == softplus(d) - t*d exactly (f32)
    # for |d| <= 100, with stable softplus = max(d,0) + log1p(exp(-|d|)).
    d = jnp.clip(d, -100.0, 100.0)
    sp = jnp.maximum(d, 0.0) + jnp.log1p(jnp.exp(-jnp.abs(d)))
    per_elem = sp - t * d

    if needs_mask:
        tb, n = per_elem.shape                     # static tile shape
        row0 = (c * steps_per_core + j) * TB       # logical (unclamped) row base
        row = jax.lax.broadcasted_iota(jnp.int32, (tb, n), 0) + row0
        per_elem = jnp.where(row < B, per_elem, 0.0)

    # Pure VPU accumulation each step; the single XLU reduction only runs in the
    # finalize step below.
    acc_ref[...] += per_elem

    @pl.when(j == pl.num_programs(1) - 1)
    def _():
        # Lane-dense splat of this core's partial sum into its own output block.
        out_ref[...] = jnp.full(out_ref.shape, jnp.sum(acc_ref[...]),
                                dtype=jnp.float32)


def ranknet_loss(output1, output2, target):
    assert output1.shape == output2.shape == target.shape
    assert output1.ndim == 2
    B, N = output1.shape
    count = B * N

    itemsize = jnp.dtype(output1.dtype).itemsize
    t_itemsize = jnp.dtype(target.dtype).itemsize
    n_lanes = -(-N // 128) * 128            # internal lane padding (byte accounting)

    # Generation-aware VMEM budget: ~3/4 of physical capacity, capped at 96 MiB.
    # v5e/v6e (128 MiB) -> 96 MiB limit; v7x (64 MiB) -> 48 MiB limit.
    try:
        vmem_cap = int(pltpu.get_tpu_info().vmem_capacity_bytes)
    except Exception:                        # not on real TPU / interpret mode
        vmem_cap = 64 * 1024 * 1024
    vmem_limit = int(min(vmem_cap * 3 // 4, 96 * 1024 * 1024))

    # Per-row byte footprint: 3 inputs x 2 pipeline buffers + 1 f32 acc tile,
    # sized with the actual input itemsizes (bf16 gets proportionally more rows).
    bytes_per_row = n_lanes * (2 * (2 * itemsize + t_itemsize) + 4)
    rows_fit = max(8, (int(vmem_limit * 0.85) // bytes_per_row) // 8 * 8)

    if B < 16:
        TB = B                               # whole row dim as one (ragged) block
    else:
        half = (-(-B // 2) + 7) // 8 * 8     # round_up(ceil(B/2), 8)
        TB = min(rows_fit, half)             # multiple of 8

    nb = -(-B // TB)                         # number of valid row blocks
    num_splits = 2 if nb >= 2 else 1         # row-halves across TensorCores
    steps_per_core = -(-nb // num_splits)
    covered = num_splits * steps_per_core * TB
    needs_mask = covered != B

    last_block = nb - 1

    def in_map(c, j):
        # Clamp so a surplus step (odd block count) never issues a fully
        # out-of-bounds DMA; its logical rows are masked to zero in-kernel.
        return (jnp.minimum(c * steps_per_core + j, last_block), 0)

    kernel = functools.partial(
        _ranknet_loss_kernel,
        B=B, TB=TB, steps_per_core=steps_per_core, needs_mask=needs_mask)

    cost = pl.CostEstimate(
        flops=8 * B * N,
        transcendentals=2 * B * N,
        bytes_accessed=(2 * itemsize + t_itemsize) * B * N
        + num_splits * 8 * 128 * 4,
    )

    partials = pl.pallas_call(
        kernel,
        out_shape=jax.ShapeDtypeStruct((num_splits, 8, 128), jnp.float32),
        grid_spec=pltpu.PrefetchScalarGridSpec(
            num_scalar_prefetch=0,
            grid=(num_splits, steps_per_core),
            in_specs=[
                pl.BlockSpec((TB, N), in_map),
                pl.BlockSpec((TB, N), in_map),
                pl.BlockSpec((TB, N), in_map),
            ],
            out_specs=pl.BlockSpec((1, 8, 128), lambda c, j: (c, 0, 0)),
            scratch_shapes=[pltpu.VMEM((TB, N), jnp.float32)],
        ),
        compiler_params=pltpu.CompilerParams(
            dimension_semantics=("parallel", "arbitrary"),
            vmem_limit_bytes=vmem_limit,
        ),
        cost_estimate=cost,
    )(output1, output2, target)

    # Final 2-element add + mean scale in the wrapper (compile-time 1/count).
    return jnp.sum(partials[:, 0, 0]) * jnp.float32(1.0 / count)


def _reference(output1, output2, target):
    # PyTorch-faithful reference: sigmoid + BCELoss with log clamp at -100.
    pij = jax.nn.sigmoid(output1 - output2)
    return jnp.mean(
        -(target * jnp.maximum(jnp.log(pij), -100.0)
          + (1.0 - target) * jnp.maximum(jnp.log(1.0 - pij), -100.0)))


if __name__ == "__main__":
    key = jax.random.PRNGKey(0)
    k1, k2, k3 = jax.random.split(key, 3)

    # (8,128)-aligned small case: single block, no mask.
    B, N = 8, 128
    output1 = jax.random.normal(k1, (B, N), dtype=jnp.float32)
    output2 = jax.random.normal(k2, (B, N), dtype=jnp.float32)
    target = jax.random.bernoulli(k3, p=0.5, shape=(B, N)).astype(jnp.float32)

    loss = jax.block_until_ready(ranknet_loss(output1, output2, target))
    ref = _reference(output1, output2, target)
    assert jnp.allclose(loss, ref, atol=1e-5, rtol=1e-5), (loss, ref)

    # Unaligned case: full-dim ragged block, no pad, no mask (TB == B).
    Br, Nr = 5, 200
    o1r = jax.random.normal(k1, (Br, Nr), dtype=jnp.float32)
    o2r = jax.random.normal(k2, (Br, Nr), dtype=jnp.float32)
    tr = jax.random.bernoulli(k3, p=0.5, shape=(Br, Nr)).astype(jnp.float32)

    loss_r = jax.block_until_ready(ranknet_loss(o1r, o2r, tr))
    ref_r = _reference(o1r, o2r, tr)
    assert jnp.allclose(loss_r, ref_r, atol=1e-5, rtol=1e-5), (loss_r, ref_r)

    # Larger unaligned case exercising the 2-way core split + ragged row mask.
    Bs, Ns = 24, 200
    o1s = jax.random.normal(k1, (Bs, Ns), dtype=jnp.float32)
    o2s = jax.random.normal(k2, (Bs, Ns), dtype=jnp.float32)
    ts = jax.random.bernoulli(k3, p=0.5, shape=(Bs, Ns)).astype(jnp.float32)

    loss_s = jax.block_until_ready(ranknet_loss(o1s, o2s, ts))
    ref_s = _reference(o1s, o2s, ts)
    assert jnp.allclose(loss_s, ref_s, atol=1e-5, rtol=1e-4), (loss_s, ref_s)

    print("KERNEL_OK")
</pallas_src>

<mosaic_0001>
module attributes {stable_mosaic.version = 11 : i64} {
  func.func @_ranknet_loss_kernel(%arg0: i32, %arg1: i32, %arg2: memref<8x128xf32, #tpu.memory_space<vmem>>, %arg3: memref<8x128xf32, #tpu.memory_space<vmem>>, %arg4: memref<8x128xf32, #tpu.memory_space<vmem>>, %arg5: memref<1x8x128xf32, #tpu.memory_space<vmem>>, %arg6: memref<8x128xf32, #tpu.memory_space<vmem>>) attributes {dimension_semantics = [#tpu.dimension_semantics<parallel>, #tpu.dimension_semantics<arbitrary>], iteration_bounds = array<i64: 1, 1>, scalar_prefetch = 0 : i64, scratch_operands = 1 : i64, tpu.core_type = #tpu.core_type<tc>, window_params = [{transform_indices = @transform_0, window_bounds = array<i64: 8, 128>}, {transform_indices = @transform_1, window_bounds = array<i64: 8, 128>}, {transform_indices = @transform_2, window_bounds = array<i64: 8, 128>}, {transform_indices = @transform_3, window_bounds = array<i64: 1, 8, 128>}]} {
    %c0_i32 = arith.constant 0 : i32
    %0 = arith.cmpi eq, %arg1, %c0_i32 : i32
    %1 = arith.extui %0 : i1 to i32
    %c0_i32_0 = arith.constant 0 : i32
    %2 = arith.cmpi ne, %1, %c0_i32_0 : i32
    scf.if %2 {
      %cst_15 = arith.constant 0.000000e+00 : f32
      %27 = vector.broadcast %cst_15 : f32 to vector<8x128xf32>
      %c0_16 = arith.constant 0 : index
      %c0_17 = arith.constant 0 : index
      %28 = vector.load %arg6[%c0_16, %c0_17] : memref<8x128xf32, #tpu.memory_space<vmem>>, vector<8x128xf32>
      tpu.vector_store %arg6[%c0_16, %c0_17], %27 {strides = array<i32>} : memref<8x128xf32, #tpu.memory_space<vmem>>, vector<8x128xf32>,
    } else {
    }
    %c0 = arith.constant 0 : index
    %c0_1 = arith.constant 0 : index
    %3 = vector.load %arg2[%c0, %c0_1] : memref<8x128xf32, #tpu.memory_space<vmem>>, vector<8x128xf32>
    %c0_2 = arith.constant 0 : index
    %c0_3 = arith.constant 0 : index
    %4 = vector.load %arg3[%c0_2, %c0_3] : memref<8x128xf32, #tpu.memory_space<vmem>>, vector<8x128xf32>
    %5 = arith.subf %3, %4 : vector<8x128xf32>
    %c0_4 = arith.constant 0 : index
    %c0_5 = arith.constant 0 : index
    %6 = vector.load %arg4[%c0_4, %c0_5] : memref<8x128xf32, #tpu.memory_space<vmem>>, vector<8x128xf32>
    %cst = arith.constant -1.000000e+02 : f32
    %cst_6 = arith.constant 1.000000e+02 : f32
    %7 = vector.broadcast %cst : f32 to vector<8x128xf32>
    %8 = arith.maximumf %7, %5 : vector<8x128xf32>
    %9 = vector.broadcast %cst_6 : f32 to vector<8x128xf32>
    %10 = arith.minimumf %9, %8 : vector<8x128xf32>
    %cst_7 = arith.constant 0.000000e+00 : f32
    %11 = vector.broadcast %cst_7 : f32 to vector<8x128xf32>
    %12 = arith.maximumf %10, %11 : vector<8x128xf32>
    %13 = math.absf %10 : vector<8x128xf32>
    %cst_8 = arith.constant 0.000000e+00 : f32
    %14 = vector.broadcast %cst_8 : f32 to vector<8x128xf32>
    %15 = arith.subf %14, %13 : vector<8x128xf32>
    %16 = math.exp %15 : vector<8x128xf32>
    %17 = math.log1p %16 : vector<8x128xf32>
    %18 = arith.addf %12, %17 : vector<8x128xf32>
    %19 = arith.mulf %6, %10 : vector<8x128xf32>
    %20 = arith.subf %18, %19 : vector<8x128xf32>
    %c0_9 = arith.constant 0 : index
    %c0_10 = arith.constant 0 : index
    %21 = vector.load %arg6[%c0_9, %c0_10] : memref<8x128xf32, #tpu.memory_space<vmem>>, vector<8x128xf32>
    %22 = arith.addf %21, %20 : vector<8x128xf32>
    %c0_11 = arith.constant 0 : index
    %c0_12 = arith.constant 0 : index
    %23 = vector.load %arg6[%c0_11, %c0_12] : memref<8x128xf32, #tpu.memory_space<vmem>>, vector<8x128xf32>
    tpu.vector_store %arg6[%c0_11, %c0_12], %22 {strides = array<i32>} : memref<8x128xf32, #tpu.memory_space<vmem>>, vector<8x128xf32>,
    %c0_i32_13 = arith.constant 0 : i32
    %24 = arith.cmpi eq, %arg1, %c0_i32_13 : i32
    %25 = arith.extui %24 : i1 to i32
    %c0_i32_14 = arith.constant 0 : i32
    %26 = arith.cmpi ne, %25, %c0_i32_14 : i32
    scf.if %26 {
      %c0_15 = arith.constant 0 : index
      %c0_16 = arith.constant 0 : index
      %27 = vector.load %arg6[%c0_15, %c0_16] : memref<8x128xf32, #tpu.memory_space<vmem>>, vector<8x128xf32>
      %28 = vector.shape_cast %27 : vector<8x128xf32> to vector<1x8x128xf32>
      %cst_17 = arith.constant dense<0.000000e+00> : vector<1xf32>
      %29 = vector.multi_reduction <add>, %28, %cst_17 [1, 2] : vector<1x8x128xf32> to vector<1xf32>
      %30 = vector.shape_cast %29 : vector<1xf32> to vector<1x1x1xf32>
      %31 = vector.extract %30[0, 0, 0] : f32 from vector<1x1x1xf32>
      %32 = vector.broadcast %31 : f32 to vector<1x8x128xf32>
      %c0_18 = arith.constant 0 : index
      %c0_19 = arith.constant 0 : index
      %c0_20 = arith.constant 0 : index
      %33 = vector.load %arg5[%c0_18, %c0_19, %c0_20] : memref<1x8x128xf32, #tpu.memory_space<vmem>>, vector<1x8x128xf32>
      tpu.vector_store %arg5[%c0_18, %c0_19, %c0_20], %32 {strides = array<i32>} : memref<1x8x128xf32, #tpu.memory_space<vmem>>, vector<1x8x128xf32>,
    } else {
    }
    return
  }
  func.func @transform_0(%arg0: i32, %arg1: i32) -> (i32, i32) {
    %c1_i32 = arith.constant 1 : i32
    %0 = arith.muli %arg0, %c1_i32 : i32
    %1 = arith.addi %0, %arg1 : i32
    %c0_i32 = arith.constant 0 : i32
    %2 = arith.minsi %1, %c0_i32 : i32
    %c0_i32_0 = arith.constant 0 : i32
    %c0_i32_1 = arith.constant 0 : i32
    return %2, %c0_i32_0 : i32, i32
  }
  func.func @transform_1(%arg0: i32, %arg1: i32) -> (i32, i32) {
    %c1_i32 = arith.constant 1 : i32
    %0 = arith.muli %arg0, %c1_i32 : i32
    %1 = arith.addi %0, %arg1 : i32
    %c0_i32 = arith.constant 0 : i32
    %2 = arith.minsi %1, %c0_i32 : i32
    %c0_i32_0 = arith.constant 0 : i32
    %c0_i32_1 = arith.constant 0 : i32
    return %2, %c0_i32_0 : i32, i32
  }
  func.func @transform_2(%arg0: i32, %arg1: i32) -> (i32, i32) {
    %c1_i32 = arith.constant 1 : i32
    %0 = arith.muli %arg0, %c1_i32 : i32
    %1 = arith.addi %0, %arg1 : i32
    %c0_i32 = arith.constant 0 : i32
    %2 = arith.minsi %1, %c0_i32 : i32
    %c0_i32_0 = arith.constant 0 : i32
    %c0_i32_1 = arith.constant 0 : i32
    return %2, %c0_i32_0 : i32, i32
  }
  func.func @transform_3(%arg0: i32, %arg1: i32) -> (i32, i32, i32) {
    %c0_i32 = arith.constant 0 : i32
    %c0_i32_0 = arith.constant 0 : i32
    %c0_i32_1 = arith.constant 0 : i32
    return %arg0, %c0_i32, %c0_i32_0 : i32, i32, i32
  }
}

</mosaic_0001>

<bundles_post_ra>
// kernel: tpu_custom_call.1
= control target key start
LH: loop header
LB: loop body
LE: loop exit
PB: predicated region body
PF: predicated region fallthrough
CT: control target
= control target key end

     0   :  { %8 = vsyncpa [#allocation4], 0  ;;  %s275_s0 = inlined_call_operand.hbm [shape: f32[8,128], index: 0, kind: input, shape index: {}]   ;;  %s276_s1 = inlined_call_operand.hbm [shape: f32[8,128], index: 1, kind: input, shape index: {}]   ;;  %s277_s2 = inlined_call_operand.hbm [shape: f32[8,128], index: 2, kind: input, shape index: {}]   ;;  %s278_s3 = inlined_call_operand.hbm [shape: f32[1,8,128], index: 3, kind: output, shape index: {}]  }
   0x1   :  { %9 = vsyncpa [#allocation7], 0 }
   0x2   :  { %10 = vsyncpa [#allocation5], 0  ;;  %s239_s12 = smov [#allocation6]   ;;  %s240_s14 = smov [#allocation3]  }
   0x3   :  { %s37_s13 = sshll.u32 %s239_s12, 4  ;;  %s22_s15 = sshll.u32 %s240_s14, 4  ;;  %s38_s13 = int_to_ptr.vmem [resolvable:$true] %s37_s13  ;;  %s23_s15 = int_to_ptr.vmem [resolvable:$true] %s22_s15 }
   0x4   :  { %s161_s16 = scalar_lea.vmem %s38_s13, 128  ;;  %p166_p1 = scmp.lt.s32.totalorder %s38_s13, %s38_s13 }
   0x5   :  { %p162_p0 = scmp.ne.s32.totalorder %s38_s13, %s161_s16  ;;  %p167_p2 = scmp.lt.s32.totalorder %s161_s16, %s161_s16 }
   0x7   :  { %p168_p3 = por %p167_p2, %p166_p1 }
   0x9   :  { %p169_p4 = pnand %p168_p3, %p162_p0 }
   0xb   :  { %172 = shalt.err (!%p169_p4)
}
   0xc   :  { %40 = dma.hbm_to_vmem [thread:$0]  %s276_s1, 128, %s38_s13, [#allocation7]  }
   0xd   :  { %s181_s19 = scalar_lea.vmem %s23_s15, 128  ;;  %p186_p6 = scmp.lt.s32.totalorder %s23_s15, %s23_s15 }
   0xe   :  { %p182_p5 = scmp.ne.s32.totalorder %s23_s15, %s181_s19  ;;  %p187_p7 = scmp.lt.s32.totalorder %s181_s19, %s181_s19 }
  0x10   :  { %p188_p8 = por %p187_p7, %p186_p6 }
  0x12   :  { %p189_p9 = pnand %p188_p8, %p182_p5 }
  0x14   :  { %192 = shalt.err (!%p189_p9)
}
  0x15   :  { %25 = dma.hbm_to_vmem [thread:$0]  %s275_s0, 128, %s23_s15, [#allocation4]  }
  0x16   :  { %s241_s22 = smov [#allocation8]  }
  0x17   :  { %s52_s23 = sshll.u32 %s241_s22, 4  ;;  %s53_s23 = int_to_ptr.vmem [resolvable:$true] %s52_s23 }
  0x18   :  { %s201_s24 = scalar_lea.vmem %s53_s23, 128  ;;  %p206_p11 = scmp.lt.s32.totalorder %s53_s23, %s53_s23 }
  0x19   :  { %p202_p10 = scmp.ne.s32.totalorder %s53_s23, %s201_s24  ;;  %p207_p12 = scmp.lt.s32.totalorder %s201_s24, %s201_s24 }
  0x1b   :  { %p208_p13 = por %p207_p12, %p206_p11 }
  0x1d   :  { %p209_p0 = pnand %p208_p13, %p202_p10 }
  0x1f   :  { %212 = shalt.err (!%p209_p0)
}
  0x20   :  { %55 = dma.hbm_to_vmem [thread:$0]  %s277_s2, 128, %s53_s23, [#allocation7]  }
  0x21   :  { %233 = dma.done.wait [#allocation4], 128  }
  0x22   :  { %234 = vsyncadd [#allocation4], 4294967168 }
  0x23   :  { %235 = dma.done.wait [#allocation7], 256  }
  0x24   :  { %236 = vsyncadd [#allocation7], 4294967040  ;;  %v79_v0 = vld [vmem:[#allocation3] sm:$0xff]  ;;  %v80_v1 = vld [vmem:[#allocation6] sm:$0xff]  ;;  %s242_s0 = smov [#allocation9]  }
  0x25   :  { %v81_v2 = vsub.f32 %v79_v0, %v80_v1  ;;  %v82_v12 = vld [vmem:[#allocation8] sm:$0xff]  ;;  %s126_s2 = sshll.u32 %s242_s0, 4  ;;  %s127_s2 = int_to_ptr.vmem [resolvable:$true] %s126_s2 }
  0x26   :  { %s213_s27 = scalar_lea.vmem %s127_s2, 128  ;;  %p218_p2 = scmp.lt.s32.totalorder %s127_s2, %s127_s2 }
  0x27   :  { %v142_v3 = vclamps-f32 %v81_v2, 100.0  ;;  %p214_p1 = scmp.ne.s32.totalorder %s127_s2, %s213_s27  ;;  %p219_p3 = scmp.lt.s32.totalorder %s213_s27, %s213_s27 }
  0x29   :  { %v86_v4 = vand.u32 2147483647, %v142_v3  ;;  %v85_v15 = vmax.f32 %v142_v3, 0.0  ;;  %v100_v17 = vmul.f32 %v142_v3, %v82_v12  ;;  %p220_p4 = por %p219_p3, %p218_p2 }
  0x2b   :  { %v87_v5 = vsub.f32 0.0, %v86_v4  ;;  %p221_p5 = pnand %p220_p4, %p214_p1 }
  0x2d   :  { %v88_v6 = vmul.f32 1.442695, %v87_v5 }
  0x2f   :  { %149 = vpow2.f32 %v88_v6 }
  0x3c   :  { %v150_v7 = vpop.eup %149 }
  0x3d   :  { %v90_v8 = vadd.f32 1.0, %v150_v7  ;;  %v93_v9 = vmul.f32 -0.5, %v150_v7  ;;  %v96_v11 = vand.u32 2147483647, %v150_v7 }
  0x3f   :  { %151 = vlog2.f32 %v90_v8  ;;  %v94_v10 = vadd.f32 1.0, %v93_v9  ;;  %vm97_vm0 = vcmp.lt.f32.partialorder %v96_v11, 0.0004427343 }
  0x41   :  { %v95_v13 = vmul.f32 %v150_v7, %v94_v10 }
  0x4c   :  { %v152_v14 = vpop.eup %151 }
  0x4d   :  { %v92_v16 = vmul.f32 0.6931472, %v152_v14 }
  0x4f   :  { %v98_v18 = vsel %vm97_vm0, %v95_v13, %v92_v16 }
  0x50   :  { %v99_v19 = vadd.f32 %v98_v18, %v85_v15 }
  0x52   :  { %v101_v20 = vsub.f32 %v99_v19, %v100_v17 }
  0x54   :  { %109 = vadd.xlane.f32.xlu0 %v101_v20 }
  0xdd   :  { %v110_v21 = vpop.xlane.xlu0 %109 }
  0xde   :  { %v111_v22 = vrot.slane %v110_v21, 4 }
  0xe0   :  { %v112_v23 = vadd.f32 %v111_v22, %v110_v21 }
  0xe2   :  { %v113_v24 = vrot.slane %v112_v23, 2 }
  0xe4   :  { %v114_v25 = vadd.f32 %v113_v24, %v112_v23 }
  0xe6   :  { %v115_v26 = vrot.slane %v114_v25, 1 }
  0xe8   :  { %v116_v27 = vadd.f32 %v115_v26, %v114_v25 }
  0xea   :  { %143 = vpush %v116_v27 }
 0x11b   :  { %s144_s26 = spop %143 }
 0x11c   :  { %v118_v28 = vstv %s144_s26 }
 0x11d   :  { %119 = vst [vmem:[#allocation9] sm:$0xff] %v118_v28 }
 0x11e   :  { %224 = shalt.err (!%p221_p5)
}
 0x11f   :  { %129 = dma.vmem_to_hbm [thread:$0]  %s127_s2, 128, %s278_s3, [#allocation5]  }
 0x120   :  { %237 = dma.done.wait [#allocation5], 128  }
 0x121   :  { %238 = vsyncadd [#allocation5], 4294967168 }
 0x122   :  { %133 = vsyncpa [#allocation4], 1 }
 0x123   :  { %134 = vsyncpa [#allocation7], 1 }
 0x124   :  { %135 = vsyncpa [#allocation5], 1 }

</bundles_post_ra>
